<compile_context>
chip_gen: v7x
topology: tpu7x:2x2x1
jax: 0.10.0
libtpu: 0.0.40
codegen_flags: <defaults>
</compile_context>

<pallas_src>
import functools

import jax
import jax.numpy as jnp
from jax.experimental import pallas as pl
from jax.experimental.pallas import tpu as pltpu

_LANE = 128
_SUBLANE = 8
_NEG_BIG = -1e30  # "minus infinity" bias for padded class columns (kept in f32)


def _round_up(n, k):
    return (n + k - 1) // k * k


def _round_down(n, k):
    return n // k * k


# ---------------------------------------------------------------------------
# Kernels
# ---------------------------------------------------------------------------
def _ensemble_kernel_resident(x_ref, w_ref, b_ref, o_ref, *, inv_m, n_models):
    """Whole weight tensor resident in VMEM; in-kernel loop over models.

    x_ref: (TB, H)     compute dtype
    w_ref: (M, H, Cp)  compute dtype   (resident, DMA'd once per call)
    b_ref: (M, 1, Cp)  f32             (resident; -1e30 in padded columns)
    o_ref: (TB, Cp)    f32
    """
    o_ref[...] = jnp.zeros_like(o_ref)

    @pl.loop(0, n_models)
    def _(m):
        logits = jnp.dot(x_ref[...], w_ref[m],
                         preferred_element_type=jnp.float32)
        logits = logits + b_ref[m]                        # (TB,Cp) + (1,Cp)
        logits = logits - jnp.max(logits, axis=-1, keepdims=True)
        p = jnp.exp(logits)
        denom = jnp.sum(p, axis=-1, keepdims=True)
        # 1/M folded into the (TB,1) reciprocal -> no epilogue rescale pass.
        o_ref[...] += p * (pl.reciprocal(denom, approx=True) * inv_m)


def _ensemble_kernel_streamed(x_ref, w_ref, b_ref, o_ref, *, inv_m):
    """Per-model weight slab streamed from HBM; the output block is the
    VMEM-resident accumulator across the last ("arbitrary") model grid axis.

    x_ref: (TB, H), w_ref: (1, H, Cp), b_ref: (M, 1, Cp) resident,
    o_ref: (TB, Cp) f32.
    """
    m = pl.program_id(1)

    @pl.when(m == 0)
    def _():
        o_ref[...] = jnp.zeros_like(o_ref)

    logits = jnp.dot(x_ref[...], w_ref[0], preferred_element_type=jnp.float32)
    logits = logits + b_ref[m]                            # (TB,Cp) + (1,Cp)
    logits = logits - jnp.max(logits, axis=-1, keepdims=True)
    p = jnp.exp(logits)
    denom = jnp.sum(p, axis=-1, keepdims=True)
    o_ref[...] += p * (pl.reciprocal(denom, approx=True) * inv_m)


# ---------------------------------------------------------------------------
# Tiling / VMEM sizing
# ---------------------------------------------------------------------------
def _default_vmem_budget_bytes():
    try:
        cap = pltpu.get_tpu_info().vmem_capacity_bytes
    except Exception:
        cap = 64 * 1024 * 1024          # conservative (v7x per-TC capacity)
    return int(0.70 * cap)


def _choose_tiling(B, H, Cp, M, block_b, budget, itemsize):
    """Pick (weights_resident, TB, estimated_vmem_bytes) under a byte budget."""
    B_r = _round_up(B, _SUBLANE)
    # Cap TB at ceil(B/2): guarantees >= 2 "parallel" batch tiles whenever the
    # batch allows -> both v7x TensorCores get work (free on v5e/v6e).
    half = _round_up(-(-B_r // 2), _SUBLANE)
    tb_cap = max(_SUBLANE, min(_round_up(block_b, _SUBLANE), B_r, half))

    # double-buffered x + f32 out + ~3 f32 (TB,Cp) softmax temps, per batch row
    per_row = 2 * H * itemsize + 2 * Cp * 4 + 3 * Cp * 4
    fixed_resident = 2 * M * H * Cp * itemsize + 2 * M * Cp * 4
    fixed_streamed = 2 * H * Cp * itemsize + 2 * M * Cp * 4

    def max_tb(fixed):
        if budget <= fixed:
            return 0
        return min(tb_cap, _round_down((budget - fixed) // per_row, _SUBLANE))

    tb_res = max_tb(fixed_resident)
    if tb_res >= min(256, tb_cap):
        return True, tb_res, fixed_resident + tb_res * per_row

    # TODO(synk): for weight slabs too big even to stream (huge H*Cp), a
    # K(H)-tiled grid with a logits scratch accumulator would be needed.
    tb = max(max_tb(fixed_streamed), _SUBLANE)
    return False, tb, fixed_streamed + tb * per_row


# ---------------------------------------------------------------------------
# Wrapper
# ---------------------------------------------------------------------------
def ensemble_forward(x, weights, biases, *, block_b=1024,
                     compute_dtype=jnp.bfloat16, vmem_budget_bytes=None):
    """Average of softmax(x @ W_m.T + b_m) over M ensemble members.

    x:       (B, H) float
    weights: (M, C, H) float   (PyTorch nn.Linear layout per member)
    biases:  (M, C) float
    returns: (B, C) float32
    """
    B, H = x.shape
    M, C, H2 = weights.shape
    assert H2 == H and biases.shape == (M, C)
    assert jnp.dtype(compute_dtype) in (jnp.dtype(jnp.bfloat16),
                                        jnp.dtype(jnp.float32))

    Cp = _round_up(C, _LANE)                      # lane-dense output stores
    if vmem_budget_bytes is None:
        vmem_budget_bytes = _default_vmem_budget_bytes()

    itemsize = jnp.dtype(compute_dtype).itemsize
    resident, TB, est_bytes = _choose_tiling(
        B, H, Cp, M, block_b, vmem_budget_bytes, itemsize)

    # Scoped-VMEM limit: above our estimate, below physical on every generation
    # (64 MiB/TC on v7x, since est <= ~0.7*capacity by construction).
    vmem_limit_bytes = int(min(max(est_bytes + (16 << 20), 32 << 20),
                               120 << 20))

    # ---- data prep (a persistent deployment would store weights this way) ---
    x_c = x.astype(compute_dtype)
    w_t = jnp.swapaxes(weights, 1, 2).astype(compute_dtype)       # (M, H, C)
    if Cp > C:
        w_p = jnp.zeros((M, H, Cp), compute_dtype).at[:, :, :C].set(w_t)
        b_p = jnp.full((M, 1, Cp), _NEG_BIG, jnp.float32).at[:, 0, :C].set(
            biases.astype(jnp.float32))
    else:
        w_p = w_t
        b_p = biases.astype(jnp.float32)[:, None, :]

    n_tiles = pl.cdiv(B, TB)
    inv_m = 1.0 / M

    if resident:
        out = pl.pallas_call(
            functools.partial(_ensemble_kernel_resident,
                              inv_m=inv_m, n_models=M),
            out_shape=jax.ShapeDtypeStruct((B, Cp), jnp.float32),
            grid=(n_tiles,),
            in_specs=[
                pl.BlockSpec((TB, H), lambda i: (i, 0)),        # batch tile
                pl.BlockSpec((M, H, Cp), lambda i: (0, 0, 0)),  # resident W
                pl.BlockSpec((M, 1, Cp), lambda i: (0, 0, 0)),  # resident b
            ],
            out_specs=pl.BlockSpec((TB, Cp), lambda i: (i, 0)),
            compiler_params=pltpu.CompilerParams(
                dimension_semantics=("parallel",),
                vmem_limit_bytes=vmem_limit_bytes),
        )(x_c, w_p, b_p)
    else:
        out = pl.pallas_call(
            functools.partial(_ensemble_kernel_streamed, inv_m=inv_m),
            out_shape=jax.ShapeDtypeStruct((B, Cp), jnp.float32),
            grid=(n_tiles, M),
            in_specs=[
                pl.BlockSpec((TB, H), lambda i, m: (i, 0)),       # reused per m
                pl.BlockSpec((1, H, Cp), lambda i, m: (m, 0, 0)), # streamed W_m
                pl.BlockSpec((M, 1, Cp), lambda i, m: (0, 0, 0)), # resident b
            ],
            out_specs=pl.BlockSpec((TB, Cp), lambda i, m: (i, 0)),
            compiler_params=pltpu.CompilerParams(
                dimension_semantics=("parallel", "arbitrary"),
                vmem_limit_bytes=vmem_limit_bytes),
        )(x_c, w_p, b_p)

    return out[:, :C]


def ensemble_reference(x, weights, biases):
    logits = jnp.einsum("bh,mch->mbc", x, weights) + biases[:, None, :]
    probs = jax.nn.softmax(logits, axis=-1)
    return jnp.mean(probs, axis=0)


if __name__ == "__main__":
    # small shapes: batch=8, hidden=32, classes=16, 3 ensemble members
    B, H, C, M = 8, 32, 16, 3

    key = jax.random.PRNGKey(0)
    kx, kw, kb = jax.random.split(key, 3)
    x = jax.random.normal(kx, (B, H), dtype=jnp.float32)
    weights = 0.1 * jax.random.normal(kw, (M, C, H), dtype=jnp.float32)
    biases = 0.05 * jax.random.normal(kb, (M, C), dtype=jnp.float32)

    ref = ensemble_reference(x, weights, biases)

    # Resident-weights path (default: these weights trivially fit VMEM).
    out = jax.block_until_ready(ensemble_forward(x, weights, biases))
    assert out.shape == (B, C)
    # bf16 matmul + approximate-reciprocal softmax -> loose tolerance
    assert jnp.allclose(out, ref, atol=2e-2, rtol=2e-2), float(
        jnp.max(jnp.abs(out - ref)))
    # averaged softmax rows sum to ~1
    assert jnp.allclose(jnp.sum(out, axis=-1), jnp.ones((B,)), atol=2e-2)

    # Streamed fallback path (forced via an artificially tiny VMEM budget).
    out_s = jax.block_until_ready(
        ensemble_forward(x, weights, biases, vmem_budget_bytes=60_000))
    assert jnp.allclose(out_s, ref, atol=2e-2, rtol=2e-2), float(
        jnp.max(jnp.abs(out_s - ref)))

    print("KERNEL_OK")
</pallas_src>

<mosaic_0001>
module attributes {stable_mosaic.version = 11 : i64} {
  func.func @_ensemble_kernel_resident(%arg0: i32, %arg1: memref<8x32xbf16, #tpu.memory_space<vmem>>, %arg2: memref<3x32x128xbf16, #tpu.memory_space<vmem>>, %arg3: memref<3x1x128xf32, #tpu.memory_space<vmem>>, %arg4: memref<8x128xf32, #tpu.memory_space<vmem>>) attributes {dimension_semantics = [#tpu.dimension_semantics<parallel>], iteration_bounds = array<i64: 1>, scalar_prefetch = 0 : i64, scratch_operands = 0 : i64, tpu.core_type = #tpu.core_type<tc>, window_params = [{transform_indices = @transform_0, window_bounds = array<i64: 8, 32>}, {pipeline_mode = #tpu.pipeline_mode<synchronous>, transform_indices = @transform_1, window_bounds = array<i64: 3, 32, 128>}, {pipeline_mode = #tpu.pipeline_mode<synchronous>, transform_indices = @transform_2, window_bounds = array<i64: 3, 1, 128>}, {transform_indices = @transform_3, window_bounds = array<i64: 8, 128>}]} {
    %cst = arith.constant 0.000000e+00 : f32
    %0 = vector.broadcast %cst : f32 to vector<8x128xf32>
    %c0 = arith.constant 0 : index
    %c0_0 = arith.constant 0 : index
    %1 = vector.load %arg4[%c0, %c0_0] : memref<8x128xf32, #tpu.memory_space<vmem>>, vector<8x128xf32>
    tpu.vector_store %arg4[%c0, %c0_0], %0 {strides = array<i32>} : memref<8x128xf32, #tpu.memory_space<vmem>>, vector<8x128xf32>,
    %c0_i32 = arith.constant 0 : i32
    %c3_i32 = arith.constant 3 : i32
    %2 = arith.addi %c0_i32, %c3_i32 : i32
    %c1_i32 = arith.constant 1 : i32
    scf.for %arg5 = %c0_i32 to %2 step %c1_i32  : i32 {
      %c1_i32_2 = arith.constant 1 : i32
      %3 = arith.muli %arg5, %c1_i32_2 : i32
      %c0_i32_3 = arith.constant 0 : i32
      %4 = arith.addi %c0_i32_3, %3 : i32
      %c0_4 = arith.constant 0 : index
      %c0_5 = arith.constant 0 : index
      %5 = vector.load %arg1[%c0_4, %c0_5] : memref<8x32xbf16, #tpu.memory_space<vmem>>, vector<8x32xbf16>
      %6 = arith.index_cast %4 : i32 to index
      %c0_6 = arith.constant 0 : index
      %c0_7 = arith.constant 0 : index
      %7 = vector.load %arg2[%6, %c0_6, %c0_7] : memref<3x32x128xbf16, #tpu.memory_space<vmem>>, vector<1x32x128xbf16>
      %8 = vector.shape_cast %7 : vector<1x32x128xbf16> to vector<32x128xbf16>
      %cst_8 = arith.constant dense<0.000000e+00> : vector<8x128xf32>
      %9 = tpu.matmul %5, %8, %cst_8 {dimension_numbers = #tpu.dot_dimension_numbers<[1], [0], [0], [1], [0, 0, 1, 1], [], []>} : vector<8x32xbf16>, vector<32x128xbf16>, vector<8x128xf32> -> vector<8x128xf32>
      %10 = arith.index_cast %4 : i32 to index
      %c0_9 = arith.constant 0 : index
      %c0_10 = arith.constant 0 : index
      %11 = vector.load %arg3[%10, %c0_9, %c0_10] : memref<3x1x128xf32, #tpu.memory_space<vmem>>, vector<1x1x128xf32>
      %12 = vector.shape_cast %11 : vector<1x1x128xf32> to vector<1x128xf32>
      %13 = vector.broadcast %12 : vector<1x128xf32> to vector<8x128xf32>
      %14 = arith.addf %9, %13 : vector<8x128xf32>
      %cst_11 = arith.constant dense<0xFF800000> : vector<8xf32>
      %15 = vector.multi_reduction <maximumf>, %14, %cst_11 [1] : vector<8x128xf32> to vector<8xf32>
      %16 = vector.shape_cast %15 : vector<8xf32> to vector<8x1xf32>
      %17 = vector.broadcast %16 : vector<8x1xf32> to vector<8x128xf32>
      %18 = arith.subf %14, %17 : vector<8x128xf32>
      %19 = math.exp %18 : vector<8x128xf32>
      %cst_12 = arith.constant dense<0.000000e+00> : vector<8xf32>
      %20 = vector.multi_reduction <add>, %19, %cst_12 [1] : vector<8x128xf32> to vector<8xf32>
      %21 = vector.shape_cast %20 : vector<8xf32> to vector<8x1xf32>
      %c0_13 = arith.constant 0 : index
      %c0_14 = arith.constant 0 : index
      %22 = vector.load %arg4[%c0_13, %c0_14] : memref<8x128xf32, #tpu.memory_space<vmem>>, vector<8x128xf32>
      %23 = tpu.reciprocal %21 {approx = true} : vector<8x1xf32> -> vector<8x1xf32>
      %cst_15 = arith.constant 0.333333343 : f32
      %24 = vector.broadcast %cst_15 : f32 to vector<8x1xf32>
      %25 = arith.mulf %23, %24 : vector<8x1xf32>
      %26 = vector.broadcast %25 : vector<8x1xf32> to vector<8x128xf32>
      %27 = arith.mulf %19, %26 : vector<8x128xf32>
      %28 = arith.addf %22, %27 : vector<8x128xf32>
      %c0_16 = arith.constant 0 : index
      %c0_17 = arith.constant 0 : index
      %29 = vector.load %arg4[%c0_16, %c0_17] : memref<8x128xf32, #tpu.memory_space<vmem>>, vector<8x128xf32>
      tpu.vector_store %arg4[%c0_16, %c0_17], %28 {strides = array<i32>} : memref<8x128xf32, #tpu.memory_space<vmem>>, vector<8x128xf32>,
    }
    %c3_i32_1 = arith.constant 3 : i32
    return
  }
  func.func @transform_0(%arg0: i32) -> (i32, i32) {
    %c0_i32 = arith.constant 0 : i32
    %c0_i32_0 = arith.constant 0 : i32
    return %arg0, %c0_i32 : i32, i32
  }
  func.func @transform_1(%arg0: i32) -> (i32, i32, i32) {
    %c0_i32 = arith.constant 0 : i32
    %c0_i32_0 = arith.constant 0 : i32
    %c0_i32_1 = arith.constant 0 : i32
    %c0_i32_2 = arith.constant 0 : i32
    return %c0_i32, %c0_i32_0, %c0_i32_1 : i32, i32, i32
  }
  func.func @transform_2(%arg0: i32) -> (i32, i32, i32) {
    %c0_i32 = arith.constant 0 : i32
    %c0_i32_0 = arith.constant 0 : i32
    %c0_i32_1 = arith.constant 0 : i32
    %c0_i32_2 = arith.constant 0 : i32
    return %c0_i32, %c0_i32_0, %c0_i32_1 : i32, i32, i32
  }
  func.func @transform_3(%arg0: i32) -> (i32, i32) {
    %c0_i32 = arith.constant 0 : i32
    %c0_i32_0 = arith.constant 0 : i32
    return %arg0, %c0_i32 : i32, i32
  }
}

</mosaic_0001>

<bundles_post_ra>
// kernel: tpu_custom_call.1
= control target key start
LH: loop header
LB: loop body
LE: loop exit
PB: predicated region body
PF: predicated region fallthrough
CT: control target
= control target key end

     0   :  { %8 = vsyncpa [#allocation3], 0  ;;  %s362_s0 = inlined_call_operand.hbm [shape: bf16[8,32], index: 0, kind: input, shape index: {}]   ;;  %s363_s1 = inlined_call_operand.hbm [shape: bf16[3,32,128], index: 1, kind: input, shape index: {}]   ;;  %s364_s2 = inlined_call_operand.vmem [shape: f32[3,1,128], index: 2, kind: input, shape index: {}]   ;;  %s365_s3 = inlined_call_operand.hbm [shape: f32[8,128], index: 3, kind: output, shape index: {}]  }
   0x1   :  { %9 = vsyncpa [#allocation6], 0 }
   0x2   :  { %10 = vsyncpa [#allocation4], 0  ;;  %s278_s12 = smov [#allocation2]   ;;  %s279_s14 = smov [#allocation5]  }
   0x3   :  { %s17_s13 = sshll.u32 %s278_s12, 4  ;;  %s26_s15 = sshll.u32 %s279_s14, 4  ;;  %s18_s13 = int_to_ptr.vmem [resolvable:$true] %s17_s13  ;;  %s306_s15 = int_to_ptr.vmem [resolvable:$true] %s26_s15 }
   0x4   :  { %s198_s18 = scalar_lea.hbm %s362_s0, 64 }
   0x5   :  { %p199_p0 = scmp.ne.s32.totalorder %s362_s0, %s198_s18  ;;  %p202_p1 = scmp.lt.u32.totalorder %s198_s18, %s362_s0 }
   0x7   :  { %p204_p2 = pnand %p202_p1, %p199_p0 }
   0x9   :  { %207 = shalt.err (!%p204_p2)
}
   0xa   :  { %s208_s23 = scalar_lea.vmem %s18_s13, 64  ;;  %p213_p4 = scmp.lt.s32.totalorder %s18_s13, %s18_s13 }
   0xb   :  { %p209_p3 = scmp.ne.s32.totalorder %s18_s13, %s208_s23  ;;  %p214_p5 = scmp.lt.s32.totalorder %s208_s23, %s208_s23 }
   0xd   :  { %p215_p6 = por %p214_p5, %p213_p4 }
   0xf   :  { %p216_p7 = pnand %p215_p6, %p209_p3 }
  0x11   :  { %219 = shalt.err (!%p216_p7)
}
  0x12   :  { %20 = dma.hbm_to_vmem [thread:$0]  %s362_s0, 64, %s18_s13, [#allocation3]  }
  0x13   :  { %s220_s28 = scalar_lea.hbm %s363_s1, 768 }
  0x14   :  { %p221_p8 = scmp.ne.s32.totalorder %s363_s1, %s220_s28  ;;  %p224_p9 = scmp.lt.u32.totalorder %s220_s28, %s363_s1 }
  0x16   :  { %p226_p10 = pnand %p224_p9, %p221_p8 }
  0x18   :  { %229 = shalt.err (!%p226_p10)
}
  0x19   :  { %s230_s6 = scalar_lea.vmem %s306_s15, 768  ;;  %p235_p12 = scmp.lt.s32.totalorder %s306_s15, %s306_s15 }
  0x1a   :  { %p231_p11 = scmp.ne.s32.totalorder %s306_s15, %s230_s6  ;;  %p236_p13 = scmp.lt.s32.totalorder %s230_s6, %s230_s6 }
  0x1c   :  { %p237_p0 = por %p236_p13, %p235_p12 }
  0x1e   :  { %p238_p1 = pnand %p237_p0, %p231_p11 }
  0x20   :  { %241 = shalt.err (!%p238_p1)
}
  0x21   :  { %s280_s0 = smov 64   ;;  %s281_s7 = smov 4  }
  0x22   :  { %32 = dma.hbm_to_vmem [thread:$0]  %s363_s1, 768, %s306_s15, [#allocation6], %s280_s0, %s280_s0, %s281_s7  }
  0x23   :  { %268 = dma.done.wait [#allocation3], 64  }
  0x24   :  { %269 = vsyncadd [#allocation3], 4294967232 }
  0x25   :  { %270 = dma.done.wait [#allocation6], 768  }
  0x26   :  { %271 = vsyncadd [#allocation6], 4294966528  ;;  %v282_v0 = vmov 0.0   ;;  %s337_s10 = smov 0  }
  0x27   :  { %42 = vst [vmem:[#allocation7] sm:$0xff] %v282_v0 }
  0x28 LB: > { %v283_v1 = vmov 0.0   ;;  %vm284_vm0 = vmmov 0   ;;  %s164_s1 = sshll.u32 %s276_s10, 4  ;;  %v49_v4 = vld [vmem:[#allocation2] sm:$0xf]  ;;  %vm77_vm1 = vcmask 261120   ;;  %s57_s14 = scalar_lea.vmem %s364_s2, %s276_s10  ;;  %s276_s10 = sphi %s337_s10, %s48_s10  }
  0x29   : > { %168 = vmatprep.subr.bf16.mxu0 %v283_v1  ;;  %172 = vmatprep.mubr.msk.bf16.mxu0 %vm284_vm0, %v283_v1  ;;  %s52_s11 = scalar_lea.vmem [#allocation5], %s164_s1  ;;  %v160_v5 = vld [vmem:[%s57_s14] ss:$0 sm:$0xff]  ;;  %s48_s10 = sadd.s32 1, %s276_s10  }
  0x2a   : > { %v192_v2 = vld [vmem:[%s52_s11] sm:$0xff]   ;;  %v193_v3 = vld [vmem:[%s52_s11 + $0x8] sm:$0xff]   ;;  %p45_p2 = scmp.ge.s32.totalorder %s48_s10, 3  }
  0x2b   : > { %169 = vmatpush3.bf16.msra.mxu0 %v192_v2  ;;  %s285_s15 = smov (%p45_p2), [#allocation7]  }
  0x2c   : > { %170 = vmatprep.subr.bf16.mxu0 %v283_v1  ;;  %s140_s16 = sshll.u32 (%p45_p2), %s285_s15, 4  ;;  %s141_s16 = int_to_ptr.vmem [resolvable:$true] %s140_s16 }
  0x2d   :  { %s242_s17 = scalar_lea.vmem (%p45_p2), %s141_s16, 128  ;;  %p247_p4 = scmp.lt.s32.totalorder (%p45_p2), %s141_s16, %s141_s16 }
  0x2e   : > { %v128_v18 = vld [vmem:[#allocation7] sm:$0xff]  ;;  %p243_p3 = scmp.ne.s32.totalorder (%p45_p2), %s141_s16, %s242_s17  ;;  %p248_p5 = scmp.lt.s32.totalorder (%p45_p2), %s242_s17, %s242_s17 }
  0x2f   : > { %171 = vmatpush3.bf16.msra.mxu0 %v193_v3 }
  0x30   :  { %p249_p6 = por (%p45_p2), %p248_p5, %p247_p4 }
  0x32   : > { %173 = vmatmul.mubr.msk.bf16.vlgmr.msra.gmra.mrb[0].mxu0 %vm77_vm1, %v49_v4  ;;  %p250_p7 = pnand (%p45_p2), %p249_p6, %p243_p3 }
 0x105   : > { %v115_v6 = vpop.f32.mrb[0].mxu0 }
 0x106   : > { %v116_v7 = vadd.f32 %v160_v5, %v115_v6  ;;  %v174_v8 = vpop.f32.mrb[1].mxu0 }
 0x107   : > { %v118_v9 = vpop.f32.mrb[2].mxu0 }
 0x108   : > { %121 = vmax.xlane.f32.xlu0 %v116_v7  ;;  %v175_v10 = vpop.f32.mrb[3].mxu0 }
 0x195   : > { %v122_v11 = vpop.xlane.xlu0 %121 }
 0x196   : > { %v123_v12 = vsub.f32 %v116_v7, %v122_v11 }
 0x198   : > { %v124_v13 = vmul.f32 1.442695, %v123_v12 }
 0x19a   : > { %194 = vpow2.f32 %v124_v13 }
 0x1a4   : > { %v195_v14 = vpop.eup %194 }
 0x1a5   : > { %126 = vadd.xlane.f32.xlu0 %v195_v14 }
 0x232   : > { %v127_v15 = vpop.xlane.xlu0 %126 }
 0x233   : > { %196 = vrcp.f32 %v127_v15 }
 0x23d   : > { %v197_v16 = vpop.eup %196 }
 0x23e   : > { %v130_v17 = vmul.f32 0.33333334, %v197_v16  ;;  %47 = sbr.rel (!%p45_p2) target bundleno = 40 (0x28), region = 49 }
 0x240   : > { %v131_v19 = vmul.f32 %v195_v14, %v130_v17 }
 0x242   : > { %v132_v20 = vadd.f32 %v131_v19, %v128_v18 }
 0x244   : > { %133 = vst [vmem:[#allocation7] sm:$0xff] %v132_v20 }
 0x245   :  { %253 = shalt.err (!%p250_p7)
}
 0x246   :  { %s254_s20 = scalar_lea.hbm %s365_s3, 128 }
 0x247   :  { %p255_p8 = scmp.ne.s32.totalorder %s365_s3, %s254_s20  ;;  %p258_p9 = scmp.lt.u32.totalorder %s254_s20, %s365_s3 }
 0x249   :  { %p260_p10 = pnand %p258_p9, %p255_p8 }
 0x24b   :  { %263 = shalt.err (!%p260_p10)
}
 0x24c   :  { %143 = dma.vmem_to_hbm [thread:$0]  %s141_s16, 128, %s365_s3, [#allocation4]  }
 0x24d   :  { %272 = dma.done.wait [#allocation4], 128  }
 0x24e   :  { %273 = vsyncadd [#allocation4], 4294967168 }
 0x24f   :  { %147 = vsyncpa [#allocation3], 1 }
 0x250   :  { %148 = vsyncpa [#allocation6], 1 }
 0x251   :  { %149 = vsyncpa [#allocation4], 1 }

</bundles_post_ra>
